<compile_context>
chip_gen: v7x
topology: tpu7x:2x2x1
jax: 0.10.0
libtpu: 0.0.40
codegen_flags: <defaults>
</compile_context>

<pallas_src>
import functools
import math

import jax
import jax.numpy as jnp
from jax.experimental import pallas as pl
from jax.experimental.pallas import tpu as pltpu


# ----------------------------------------------------------------------------
# Pallas kernel: fused (x @ w) + bias + ReLU
# ----------------------------------------------------------------------------
def _matmul_bias_relu_kernel(x_ref, w_ref, b_ref, o_ref):
    # bf16 operands -> native MXU throughput; f32 accumulate.
    y = jnp.dot(x_ref[...], w_ref[...], preferred_element_type=jnp.float32)
    y = jnp.maximum(y + b_ref[...], 0.0)
    o_ref[...] = y.astype(o_ref.dtype)


def _choose_row_tile(M, K, Nc, vmem_budget=24 * 1024 * 1024):
    """Largest row tile whose (double-buffered) working set fits the budget."""
    def vmem_bytes(tm):
        return (2 * tm * K * 2        # x block, bf16, double-buffered
                + 2 * tm * Nc * 4     # out block, f32, double-buffered
                + 2 * K * Nc * 2      # weight (grid-invariant), worst-case 2x
                + 2 * Nc * 4)         # bias

    tm = 8
    for cand in (8192, 4096, 2048, 1024, 512, 256, 128, 64, 32, 16, 8):
        if vmem_bytes(cand) <= vmem_budget:
            tm = cand
            break
    # never exceed the (8-padded) row count
    return min(tm, ((M + 7) // 8) * 8)


def matmul_bias_relu(x, w, b, *, out_dtype=jnp.float32):
    """relu(x @ w + b).   x:(M,K)  w:(K,N)  b:(N,)  ->  (M,N) out_dtype."""
    M, K = x.shape
    K2, Nc = w.shape
    assert K == K2 and b.shape == (Nc,)

    xb = x.astype(jnp.bfloat16)
    wb = w.astype(jnp.bfloat16)
    b2 = b.reshape(1, Nc).astype(jnp.float32)

    tm = _choose_row_tile(M, K, Nc)
    Mp = ((M + tm - 1) // tm) * tm            # pad rows; no full-M fallback
    if Mp != M:
        xb = jnp.pad(xb, ((0, Mp - M), (0, 0)))

    out = pl.pallas_call(
        _matmul_bias_relu_kernel,
        out_shape=jax.ShapeDtypeStruct((Mp, Nc), out_dtype),
        grid=(Mp // tm,),
        in_specs=[
            pl.BlockSpec((tm, K), lambda i: (i, 0)),
            pl.BlockSpec((K, Nc), lambda i: (0, 0)),   # grid-invariant weight
            pl.BlockSpec((1, Nc), lambda i: (0, 0)),   # grid-invariant bias
        ],
        out_specs=pl.BlockSpec((tm, Nc), lambda i: (i, 0)),
        compiler_params=pltpu.CompilerParams(
            dimension_semantics=("parallel",),         # megacore-shardable (v7x)
            vmem_limit_bytes=32 * 1024 * 1024,
        ),
    )(xb, wb, b2)
    return out[:M] if Mp != M else out


# ----------------------------------------------------------------------------
# PixelShuffle module forward (NCHW in, NCHW out — PyTorch semantics)
# ----------------------------------------------------------------------------
def pixel_shuffle_forward(x_nchw, w_oc_ic, bias, scale):
    """y = PixelShuffle(scale)( ReLU( Conv1x1(x) ) )."""
    N, C, H, W = x_nchw.shape
    r = scale
    assert w_oc_ic.shape == (C * r * r, C) and bias.shape == (C * r * r,)

    # NCHW -> (rows, C) channels-last for the matmul kernel (fuses with the
    # bf16 cast inside matmul_bias_relu).
    x2 = jnp.transpose(x_nchw, (0, 2, 3, 1)).reshape(N * H * W, C)
    y = matmul_bias_relu(x2, w_oc_ic.T, bias)          # (N*H*W, C*r*r) f32

    # Sub-pixel shuffle + NCHW output, fused into ONE transpose pass.
    # Output column oc = c*r*r + ry*r + rx  (PyTorch conv/PixelShuffle order).
    y = y.reshape(N, H, W, C, r, r)
    y = jnp.transpose(y, (0, 3, 1, 4, 2, 5))           # (N, C, H, r, W, r)
    return y.reshape(N, C, H * r, W * r)


# ----------------------------------------------------------------------------
# Parameter init (mirrors the module: ICNR conv weight + default conv bias)
# ----------------------------------------------------------------------------
def icnr_conv1x1_params(key, n_channels, scale):
    """Conv2d(C, C*scale^2, 1) with icnr() weight init and PyTorch bias init."""
    kw, kb = jax.random.split(key)
    # kaiming_normal_ base (C, C, 1, 1) kernel, replicated over the scale^2
    # sub-pixel positions (checkerboard-artifact-free init).
    base = jax.random.normal(kw, (n_channels, n_channels), jnp.float32)
    base = base * math.sqrt(2.0 / n_channels)
    w = jnp.repeat(base, scale * scale, axis=0)        # w[c*r*r + s, :] = base[c]
    bound = 1.0 / math.sqrt(n_channels)
    b = jax.random.uniform(kb, (n_channels * scale * scale,), jnp.float32,
                           -bound, bound)
    return w, b


# ----------------------------------------------------------------------------
# Pure-JAX reference (mirrors the PyTorch module exactly)
# ----------------------------------------------------------------------------
def pixel_shuffle_ref(x_nchw, w_oc_ic, bias, scale):
    r = scale
    y = jnp.einsum("nchw,oc->nohw", x_nchw.astype(jnp.float32),
                   w_oc_ic.astype(jnp.float32),
                   precision=jax.lax.Precision.HIGHEST)
    y = jnp.maximum(y + bias[None, :, None, None], 0.0)
    N, Co, H, W = y.shape
    C = Co // (r * r)
    y = y.reshape(N, C, r, r, H, W)
    y = jnp.transpose(y, (0, 1, 4, 2, 5, 3))           # (N, C, H, r, W, r)
    return y.reshape(N, C, H * r, W * r)


# ----------------------------------------------------------------------------
if __name__ == "__main__":
    key = jax.random.PRNGKey(0)
    k1, k2, k3, k4, k5 = jax.random.split(key, 5)

    # Case 1: faithful module config (ICNR init); C*r^2 = 128 -> lane-dense out.
    C1, r1, N1, H1, W1 = 32, 2, 2, 16, 16
    w1, b1 = icnr_conv1x1_params(k1, C1, r1)
    x1 = jax.random.normal(k2, (N1, C1, H1, W1), jnp.float32)
    fwd1 = jax.jit(functools.partial(pixel_shuffle_forward, scale=r1))
    out1 = fwd1(x1, w1, b1)
    jax.block_until_ready(out1)
    ref1 = pixel_shuffle_ref(x1, w1, b1, r1)
    assert out1.shape == (N1, C1, H1 * r1, W1 * r1)
    assert jnp.allclose(out1, ref1, rtol=5e-2, atol=5e-2), \
        float(jnp.max(jnp.abs(out1 - ref1)))

    # Case 2: odd shapes, scale=3, fully-random weights (exercises the row
    # padding path and catches any sub-pixel permutation mistakes that the
    # replicated ICNR weights would hide).
    C2, r2, N2, H2, W2 = 21, 3, 1, 12, 20
    w2 = jax.random.normal(k3, (C2 * r2 * r2, C2), jnp.float32) * math.sqrt(2.0 / C2)
    bound = 1.0 / math.sqrt(C2)
    b2 = jax.random.uniform(k4, (C2 * r2 * r2,), jnp.float32, -bound, bound)
    x2 = jax.random.normal(k5, (N2, C2, H2, W2), jnp.float32)
    fwd2 = jax.jit(functools.partial(pixel_shuffle_forward, scale=r2))
    out2 = fwd2(x2, w2, b2)
    jax.block_until_ready(out2)
    ref2 = pixel_shuffle_ref(x2, w2, b2, r2)
    assert out2.shape == (N2, C2, H2 * r2, W2 * r2)
    assert jnp.allclose(out2, ref2, rtol=5e-2, atol=5e-2), \
        float(jnp.max(jnp.abs(out2 - ref2)))

    print("KERNEL_OK")
</pallas_src>

<mosaic_0001>
module attributes {stable_mosaic.version = 11 : i64} {
  func.func @_matmul_bias_relu_kernel(%arg0: i32, %arg1: memref<512x32xbf16, #tpu.memory_space<vmem>>, %arg2: memref<32x128xbf16, #tpu.memory_space<vmem>>, %arg3: memref<1x128xf32, #tpu.memory_space<vmem>>, %arg4: memref<512x128xf32, #tpu.memory_space<vmem>>) attributes {dimension_semantics = [#tpu.dimension_semantics<parallel>], iteration_bounds = array<i64: 1>, scalar_prefetch = 0 : i64, scratch_operands = 0 : i64, tpu.core_type = #tpu.core_type<tc>, window_params = [{transform_indices = @transform_0, window_bounds = array<i64: 512, 32>}, {pipeline_mode = #tpu.pipeline_mode<synchronous>, transform_indices = @transform_1, window_bounds = array<i64: 32, 128>}, {pipeline_mode = #tpu.pipeline_mode<synchronous>, transform_indices = @transform_2, window_bounds = array<i64: 1, 128>}, {transform_indices = @transform_3, window_bounds = array<i64: 512, 128>}]} {
    %c0 = arith.constant 0 : index
    %c0_0 = arith.constant 0 : index
    %0 = vector.load %arg1[%c0, %c0_0] : memref<512x32xbf16, #tpu.memory_space<vmem>>, vector<512x32xbf16>
    %c0_1 = arith.constant 0 : index
    %c0_2 = arith.constant 0 : index
    %1 = vector.load %arg2[%c0_1, %c0_2] : memref<32x128xbf16, #tpu.memory_space<vmem>>, vector<32x128xbf16>
    %cst = arith.constant dense<0.000000e+00> : vector<512x128xf32>
    %2 = tpu.matmul %0, %1, %cst {dimension_numbers = #tpu.dot_dimension_numbers<[1], [0], [0], [1], [0, 0, 1, 1], [], []>} : vector<512x32xbf16>, vector<32x128xbf16>, vector<512x128xf32> -> vector<512x128xf32>
    %c0_3 = arith.constant 0 : index
    %c0_4 = arith.constant 0 : index
    %3 = vector.load %arg3[%c0_3, %c0_4] : memref<1x128xf32, #tpu.memory_space<vmem>>, vector<1x128xf32>
    %4 = vector.broadcast %3 : vector<1x128xf32> to vector<512x128xf32>
    %5 = arith.addf %2, %4 : vector<512x128xf32>
    %cst_5 = arith.constant 0.000000e+00 : f32
    %6 = vector.broadcast %cst_5 : f32 to vector<512x128xf32>
    %7 = arith.maximumf %5, %6 : vector<512x128xf32>
    %c0_6 = arith.constant 0 : index
    %c0_7 = arith.constant 0 : index
    %8 = vector.load %arg4[%c0_6, %c0_7] : memref<512x128xf32, #tpu.memory_space<vmem>>, vector<512x128xf32>
    tpu.vector_store %arg4[%c0_6, %c0_7], %7 {strides = array<i32>} : memref<512x128xf32, #tpu.memory_space<vmem>>, vector<512x128xf32>,
    return
  }
  func.func @transform_0(%arg0: i32) -> (i32, i32) {
    %c0_i32 = arith.constant 0 : i32
    %c0_i32_0 = arith.constant 0 : i32
    return %arg0, %c0_i32 : i32, i32
  }
  func.func @transform_1(%arg0: i32) -> (i32, i32) {
    %c0_i32 = arith.constant 0 : i32
    %c0_i32_0 = arith.constant 0 : i32
    %c0_i32_1 = arith.constant 0 : i32
    return %c0_i32, %c0_i32_0 : i32, i32
  }
  func.func @transform_2(%arg0: i32) -> (i32, i32) {
    %c0_i32 = arith.constant 0 : i32
    %c0_i32_0 = arith.constant 0 : i32
    %c0_i32_1 = arith.constant 0 : i32
    return %c0_i32, %c0_i32_0 : i32, i32
  }
  func.func @transform_3(%arg0: i32) -> (i32, i32) {
    %c0_i32 = arith.constant 0 : i32
    %c0_i32_0 = arith.constant 0 : i32
    return %arg0, %c0_i32 : i32, i32
  }
}

</mosaic_0001>

<bundles_post_ra>
// kernel: pixel_shuffle_forward.1
= control target key start
LH: loop header
LB: loop body
LE: loop exit
PB: predicated region body
PF: predicated region fallthrough
CT: control target
= control target key end

     0   :  { %8 = vsyncpa [#allocation3], 0  ;;  %s1025_s12 = smov [#allocation2]   ;;  %s1450_s0 = inlined_call_operand.vmem [shape: bf16[512,32], index: 0, kind: input, shape index: {}]   ;;  %s1451_s1 = inlined_call_operand.vmem [shape: bf16[32,128], index: 1, kind: input, shape index: {}]   ;;  %s1452_s2 = inlined_call_operand.hbm [shape: f32[1,128], index: 2, kind: input, shape index: {}]   ;;  %s1453_s3 = inlined_call_operand.vmem [shape: f32[512,128], index: 3, kind: output, shape index: {}]  }
   0x1   :  { %s19_s13 = sshll.u32 %s1025_s12, 4  ;;  %s1001_s16 = scalar_lea.hbm %s1452_s2, 16  ;;  %s20_s13 = int_to_ptr.vmem [resolvable:$true] %s19_s13 }
   0x2   :  { %p1002_p0 = scmp.ne.s32.totalorder %s1452_s2, %s1001_s16  ;;  %p1005_p1 = scmp.lt.u32.totalorder %s1001_s16, %s1452_s2 }
   0x4   :  { %p1007_p2 = pnand %p1005_p1, %p1002_p0 }
   0x6   :  { %1010 = shalt.err (!%p1007_p2)
}
   0x7   :  { %s1011_s21 = scalar_lea.vmem %s20_s13, 16  ;;  %s1015_s22 = scalar_lea.vmem %s20_s13, 32 }
   0x8   :  { %p1012_p3 = scmp.ne.s32.totalorder %s20_s13, %s1011_s21  ;;  %p1016_p4 = scmp.lt.s32.totalorder %s20_s13, %s20_s13 }
   0x9   :  { %p1017_p5 = scmp.lt.s32.totalorder %s1015_s22, %s1011_s21 }
   0xb   :  { %p1018_p6 = por %p1017_p5, %p1016_p4 }
   0xd   :  { %p1019_p7 = pnand %p1018_p6, %p1012_p3 }
   0xf   :  { %1022 = shalt.err (!%p1019_p7)
}
  0x10   :  { %22 = dma.hbm_to_vmem [thread:$0]  %s1452_s2, 16, %s20_s13, [#allocation3]  }
  0x11   :  { %1023 = dma.done.wait [#allocation3], 16  }
  0x12   :  { %1024 = vsyncadd [#allocation3], 4294967280  ;;  %v967_v0 = vld [vmem:[%s1451_s1] sm:$0xff]   ;;  %v968_v1 = vld [vmem:[%s1451_s1 + $0x8] sm:$0xff]   ;;  %vm274_vm0 = vcmask 261120  }
  0x13   :  { %894 = vmatprep.subr.bf16.mxu0 %v967_v0  ;;  %962 = vmatprep.subr.bf16.mxu1 %v967_v0  ;;  %v969_v2 = vld [vmem:[%s1450_s0] sm:$0xff]   ;;  %v971_v4 = vld [vmem:[%s1450_s0 + $0x8] sm:$0xff]   ;;  %v973_v6 = vld [vmem:[%s1450_s0 + $0x10] sm:$0xff]  }
  0x14   :  { %895 = vmatpush3.bf16.msra.mxu0 %v967_v0  ;;  %964 = vmatpush3.bf16.msra.mxu1 %v967_v0  ;;  %v970_v3 = vld [vmem:[%s1450_s0 + $0x80] sm:$0xff]   ;;  %v972_v5 = vld [vmem:[%s1450_s0 + $0x88] sm:$0xff]   ;;  %v974_v7 = vld [vmem:[%s1450_s0 + $0x90] sm:$0xff]  }
  0x15   :  { %896 = vmatprep.subr.bf16.mxu0 %v968_v1  ;;  %963 = vmatprep.subr.bf16.mxu1 %v968_v1  ;;  %v975_v8 = vld [vmem:[%s1450_s0 + $0x18] sm:$0xff]   ;;  %v977_v10 = vld [vmem:[%s1450_s0 + $0x20] sm:$0xff]   ;;  %v979_v12 = vld [vmem:[%s1450_s0 + $0x28] sm:$0xff]  }
  0x16   :  { %898 = vmatprep.mubr.msk.bf16.mxu0 %vm274_vm0, %v969_v2  ;;  %930 = vmatprep.mubr.msk.bf16.mxu1 %vm274_vm0, %v970_v3  ;;  %v976_v9 = vld [vmem:[%s1450_s0 + $0x98] sm:$0xff]   ;;  %v978_v11 = vld [vmem:[%s1450_s0 + $0xa0] sm:$0xff]   ;;  %v980_v13 = vld [vmem:[%s1450_s0 + $0xa8] sm:$0xff]  }
  0x17   :  { %v981_v14 = vld [vmem:[%s1450_s0 + $0x30] sm:$0xff]   ;;  %v983_v16 = vld [vmem:[%s1450_s0 + $0x38] sm:$0xff]   ;;  %v985_v18 = vld [vmem:[%s1450_s0 + $0x40] sm:$0xff]  }
  0x18   :  { %897 = vmatpush3.bf16.msra.mxu0 %v968_v1  ;;  %965 = vmatpush3.bf16.msra.mxu1 %v968_v1  ;;  %v982_v15 = vld [vmem:[%s1450_s0 + $0xb0] sm:$0xff]   ;;  %v984_v17 = vld [vmem:[%s1450_s0 + $0xb8] sm:$0xff]   ;;  %v986_v19 = vld [vmem:[%s1450_s0 + $0xc0] sm:$0xff]  }
  0x19   :  { %v987_v20 = vld [vmem:[%s1450_s0 + $0x48] sm:$0xff]   ;;  %v989_v22 = vld [vmem:[%s1450_s0 + $0x50] sm:$0xff]   ;;  %v991_v24 = vld [vmem:[%s1450_s0 + $0x58] sm:$0xff]  }
  0x1a   :  { %v988_v21 = vld [vmem:[%s1450_s0 + $0xc8] sm:$0xff]   ;;  %v990_v23 = vld [vmem:[%s1450_s0 + $0xd0] sm:$0xff]   ;;  %v992_v25 = vld [vmem:[%s1450_s0 + $0xd8] sm:$0xff]  }
  0x1b   :  { %899 = vmatmul.mubr.msk.bf16.vlgmr.msra.gmra.mrb[0].mxu0 %vm274_vm0, %v971_v4  ;;  %931 = vmatmul.mubr.msk.bf16.vlgmr.msra.gmra.mrb[0].mxu1 %vm274_vm0, %v972_v5  ;;  %v993_v26 = vld [vmem:[%s1450_s0 + $0x60] sm:$0xff]   ;;  %v995_v28 = vld [vmem:[%s1450_s0 + $0x68] sm:$0xff]   ;;  %v997_v30 = vld [vmem:[%s1450_s0 + $0x70] sm:$0xff]  }
  0x1c   :  { %902 = vmatprep.mubr.msk.bf16.mxu0 %vm274_vm0, %v973_v6  ;;  %934 = vmatprep.mubr.msk.bf16.mxu1 %vm274_vm0, %v974_v7  ;;  %v994_v27 = vld [vmem:[%s1450_s0 + $0xe0] sm:$0xff]   ;;  %v996_v29 = vld [vmem:[%s1450_s0 + $0xe8] sm:$0xff]   ;;  %v998_v31 = vld [vmem:[%s1450_s0 + $0xf0] sm:$0xff]  }
  0x1d   :  { %v999_v32 = vld [vmem:[%s1450_s0 + $0x78] sm:$0xff]   ;;  %v1192_v34 = vld [vmem:[#allocation2] ss:$0 sm:$0xff] }
  0x1e   :  { %v1000_v33 = vld [vmem:[%s1450_s0 + $0xf8] sm:$0xff]  }
  0x23   :  { %903 = vmatmul.mubr.msk.bf16.gmra.mrb[4].mxu0 %vm274_vm0, %v975_v8  ;;  %935 = vmatmul.mubr.msk.bf16.gmra.mrb[4].mxu1 %vm274_vm0, %v976_v9 }
  0x24   :  { %906 = vmatprep.mubr.msk.bf16.mxu0 %vm274_vm0, %v977_v10  ;;  %938 = vmatprep.mubr.msk.bf16.mxu1 %vm274_vm0, %v978_v11 }
  0x2b   :  { %907 = vmatmul.mubr.msk.bf16.gmra.mrb[8].mxu0 %vm274_vm0, %v979_v12  ;;  %939 = vmatmul.mubr.msk.bf16.gmra.mrb[8].mxu1 %vm274_vm0, %v980_v13 }
  0x2c   :  { %910 = vmatprep.mubr.msk.bf16.mxu0 %vm274_vm0, %v981_v14  ;;  %942 = vmatprep.mubr.msk.bf16.mxu1 %vm274_vm0, %v982_v15 }
  0x33   :  { %911 = vmatmul.mubr.msk.bf16.gmra.mrb[12].mxu0 %vm274_vm0, %v983_v16  ;;  %943 = vmatmul.mubr.msk.bf16.gmra.mrb[12].mxu1 %vm274_vm0, %v984_v17 }
  0x34   :  { %914 = vmatprep.mubr.msk.bf16.mxu0 %vm274_vm0, %v985_v18  ;;  %946 = vmatprep.mubr.msk.bf16.mxu1 %vm274_vm0, %v986_v19 }
  0x3b   :  { %915 = vmatmul.mubr.msk.bf16.gmra.mrb[16].mxu0 %vm274_vm0, %v987_v20  ;;  %947 = vmatmul.mubr.msk.bf16.gmra.mrb[16].mxu1 %vm274_vm0, %v988_v21 }
  0x3c   :  { %918 = vmatprep.mubr.msk.bf16.mxu0 %vm274_vm0, %v989_v22  ;;  %950 = vmatprep.mubr.msk.bf16.mxu1 %vm274_vm0, %v990_v23 }
  0x43   :  { %919 = vmatmul.mubr.msk.bf16.gmra.mrb[20].mxu0 %vm274_vm0, %v991_v24  ;;  %951 = vmatmul.mubr.msk.bf16.gmra.mrb[20].mxu1 %vm274_vm0, %v992_v25 }
  0x44   :  { %922 = vmatprep.mubr.msk.bf16.mxu0 %vm274_vm0, %v993_v26  ;;  %954 = vmatprep.mubr.msk.bf16.mxu1 %vm274_vm0, %v994_v27 }
  0x4b   :  { %923 = vmatmul.mubr.msk.bf16.gmra.mrb[24].mxu0 %vm274_vm0, %v995_v28  ;;  %955 = vmatmul.mubr.msk.bf16.gmra.mrb[24].mxu1 %vm274_vm0, %v996_v29 }
  0x4c   :  { %926 = vmatprep.mubr.msk.bf16.mxu0 %vm274_vm0, %v997_v30  ;;  %958 = vmatprep.mubr.msk.bf16.mxu1 %vm274_vm0, %v998_v31 }
  0x53   :  { %927 = vmatmul.mubr.msk.bf16.gmra.mrb[28].mxu0 %vm274_vm0, %v999_v32  ;;  %959 = vmatmul.mubr.msk.bf16.gmra.mrb[28].mxu1 %vm274_vm0, %v1000_v33 }
  0xee   :  { %v900_v35 = vpop.f32.mrb[0].mxu0  ;;  %v932_v36 = vpop.f32.mrb[0].mxu1 }
  0xef   :  { %v414_v37 = vadd.f32 %v900_v35, %v1192_v34  ;;  %v542_v38 = vadd.f32 %v932_v36, %v1192_v34  ;;  %v405_v39 = vpop.f32.mrb[1].mxu0  ;;  %v533_v40 = vpop.f32.mrb[1].mxu1 }
  0xf0   :  { %v406_v41 = vadd.f32 %v1192_v34, %v405_v39  ;;  %v534_v42 = vadd.f32 %v1192_v34, %v533_v40  ;;  %v901_v43 = vpop.f32.mrb[2].mxu0  ;;  %v933_v44 = vpop.f32.mrb[2].mxu1 }
  0xf1   :  { %v662_v45 = vmax.f32 %v414_v37, 0.0  ;;  %v694_v46 = vmax.f32 %v542_v38, 0.0  ;;  %v417_v47 = vadd.f32 %v901_v43, %v1192_v34  ;;  %v545_v48 = vadd.f32 %v933_v44, %v1192_v34  ;;  %v408_v49 = vpop.f32.mrb[3].mxu0  ;;  %v536_v50 = vpop.f32.mrb[3].mxu1 }
  0xf2   :  { %v660_v51 = vmax.f32 %v406_v41, 0.0  ;;  %v692_v52 = vmax.f32 %v534_v42, 0.0  ;;  %v409_v53 = vadd.f32 %v1192_v34, %v408_v49  ;;  %v537_v54 = vadd.f32 %v1192_v34, %v536_v50 }
  0xf3   :  { %726 = vst [vmem:[%s1453_s3 + $0x10] sm:$0xff] %v662_v45  ;;  %758 = vst [vmem:[%s1453_s3 + $0x110] sm:$0xff] %v694_v46  ;;  %v663_v55 = vmax.f32 %v417_v47, 0.0  ;;  %v695_v56 = vmax.f32 %v545_v48, 0.0 }
  0xf4   :  { %724 = vst [vmem:[%s1453_s3] sm:$0xff] %v660_v51  ;;  %756 = vst [vmem:[%s1453_s3 + $0x100] sm:$0xff] %v692_v52  ;;  %v661_v57 = vmax.f32 %v409_v53, 0.0  ;;  %v693_v58 = vmax.f32 %v537_v54, 0.0 }
  0xf5   :  { %727 = vst [vmem:[%s1453_s3 + $0x18] sm:$0xff] %v663_v55  ;;  %759 = vst [vmem:[%s1453_s3 + $0x118] sm:$0xff] %v695_v56 }
  0xf6   :  { %725 = vst [vmem:[%s1453_s3 + $0x8] sm:$0xff] %v661_v57  ;;  %757 = vst [vmem:[%s1453_s3 + $0x108] sm:$0xff] %v693_v58  ;;  %v904_v59 = vpop.f32.mrb[4].mxu0  ;;  %v936_v60 = vpop.f32.mrb[4].mxu1 }
  0xf7   :  { %v430_v61 = vadd.f32 %v904_v59, %v1192_v34  ;;  %v558_v62 = vadd.f32 %v936_v60, %v1192_v34  ;;  %v421_v63 = vpop.f32.mrb[5].mxu0  ;;  %v549_v0 = vpop.f32.mrb[5].mxu1 }
  0xf8   :  { %v422_v1 = vadd.f32 %v1192_v34, %v421_v63  ;;  %v550_v2 = vadd.f32 %v1192_v34, %v549_v0  ;;  %v905_v3 = vpop.f32.mrb[6].mxu0  ;;  %v937_v4 = vpop.f32.mrb[6].mxu1 }
  0xf9   :  { %v666_v5 = vmax.f32 %v430_v61, 0.0  ;;  %v698_v6 = vmax.f32 %v558_v62, 0.0  ;;  %v433_v7 = vadd.f32 %v905_v3, %v1192_v34  ;;  %v561_v8 = vadd.f32 %v937_v4, %v1192_v34  ;;  %v424_v9 = vpop.f32.mrb[7].mxu0  ;;  %v552_v10 = vpop.f32.mrb[7].mxu1 }
  0xfa   :  { %v664_v11 = vmax.f32 %v422_v1, 0.0  ;;  %v696_v12 = vmax.f32 %v550_v2, 0.0  ;;  %v425_v13 = vadd.f32 %v1192_v34, %v424_v9  ;;  %v553_v14 = vadd.f32 %v1192_v34, %v552_v10 }
  0xfb   :  { %730 = vst [vmem:[%s1453_s3 + $0x30] sm:$0xff] %v666_v5  ;;  %762 = vst [vmem:[%s1453_s3 + $0x130] sm:$0xff] %v698_v6  ;;  %v667_v15 = vmax.f32 %v433_v7, 0.0  ;;  %v699_v16 = vmax.f32 %v561_v8, 0.0 }
  0xfc   :  { %728 = vst [vmem:[%s1453_s3 + $0x20] sm:$0xff] %v664_v11  ;;  %760 = vst [vmem:[%s1453_s3 + $0x120] sm:$0xff] %v696_v12  ;;  %v665_v17 = vmax.f32 %v425_v13, 0.0  ;;  %v697_v18 = vmax.f32 %v553_v14, 0.0 }
  0xfd   :  { %731 = vst [vmem:[%s1453_s3 + $0x38] sm:$0xff] %v667_v15  ;;  %763 = vst [vmem:[%s1453_s3 + $0x138] sm:$0xff] %v699_v16 }
  0xfe   :  { %729 = vst [vmem:[%s1453_s3 + $0x28] sm:$0xff] %v665_v17  ;;  %761 = vst [vmem:[%s1453_s3 + $0x128] sm:$0xff] %v697_v18  ;;  %v908_v19 = vpop.f32.mrb[8].mxu0  ;;  %v940_v20 = vpop.f32.mrb[8].mxu1 }
  0xff   :  { %v446_v21 = vadd.f32 %v908_v19, %v1192_v34  ;;  %v574_v22 = vadd.f32 %v940_v20, %v1192_v34  ;;  %v437_v23 = vpop.f32.mrb[9].mxu0  ;;  %v565_v24 = vpop.f32.mrb[9].mxu1 }
 0x100   :  { %v438_v25 = vadd.f32 %v1192_v34, %v437_v23  ;;  %v566_v26 = vadd.f32 %v1192_v34, %v565_v24  ;;  %v909_v27 = vpop.f32.mrb[10].mxu0  ;;  %v941_v28 = vpop.f32.mrb[10].mxu1 }
 0x101   :  { %v670_v29 = vmax.f32 %v446_v21, 0.0  ;;  %v702_v30 = vmax.f32 %v574_v22, 0.0  ;;  %v449_v31 = vadd.f32 %v909_v27, %v1192_v34  ;;  %v577_v32 = vadd.f32 %v941_v28, %v1192_v34  ;;  %v440_v33 = vpop.f32.mrb[11].mxu0  ;;  %v568_v35 = vpop.f32.mrb[11].mxu1 }
 0x102   :  { %v668_v36 = vmax.f32 %v438_v25, 0.0  ;;  %v700_v37 = vmax.f32 %v566_v26, 0.0  ;;  %v441_v38 = vadd.f32 %v1192_v34, %v440_v33  ;;  %v569_v39 = vadd.f32 %v1192_v34, %v568_v35 }
 0x103   :  { %734 = vst [vmem:[%s1453_s3 + $0x50] sm:$0xff] %v670_v29  ;;  %766 = vst [vmem:[%s1453_s3 + $0x150] sm:$0xff] %v702_v30  ;;  %v671_v40 = vmax.f32 %v449_v31, 0.0  ;;  %v703_v41 = vmax.f32 %v577_v32, 0.0 }
 0x104   :  { %732 = vst [vmem:[%s1453_s3 + $0x40] sm:$0xff] %v668_v36  ;;  %764 = vst [vmem:[%s1453_s3 + $0x140] sm:$0xff] %v700_v37  ;;  %v669_v42 = vmax.f32 %v441_v38, 0.0  ;;  %v701_v43 = vmax.f32 %v569_v39, 0.0 }
 0x105   :  { %735 = vst [vmem:[%s1453_s3 + $0x58] sm:$0xff] %v671_v40  ;;  %767 = vst [vmem:[%s1453_s3 + $0x158] sm:$0xff] %v703_v41 }
 0x106   :  { %733 = vst [vmem:[%s1453_s3 + $0x48] sm:$0xff] %v669_v42  ;;  %765 = vst [vmem:[%s1453_s3 + $0x148] sm:$0xff] %v701_v43  ;;  %v912_v44 = vpop.f32.mrb[12].mxu0  ;;  %v944_v45 = vpop.f32.mrb[12].mxu1 }
 0x107   :  { %v462_v46 = vadd.f32 %v912_v44, %v1192_v34  ;;  %v590_v47 = vadd.f32 %v944_v45, %v1192_v34  ;;  %v453_v48 = vpop.f32.mrb[13].mxu0  ;;  %v581_v49 = vpop.f32.mrb[13].mxu1 }
 0x108   :  { %v454_v50 = vadd.f32 %v1192_v34, %v453_v48  ;;  %v582_v51 = vadd.f32 %v1192_v34, %v581_v49  ;;  %v913_v52 = vpop.f32.mrb[14].mxu0  ;;  %v945_v53 = vpop.f32.mrb[14].mxu1 }
 0x109   :  { %v674_v54 = vmax.f32 %v462_v46, 0.0  ;;  %v706_v55 = vmax.f32 %v590_v47, 0.0  ;;  %v465_v56 = vadd.f32 %v913_v52, %v1192_v34  ;;  %v593_v57 = vadd.f32 %v945_v53, %v1192_v34  ;;  %v456_v58 = vpop.f32.mrb[15].mxu0  ;;  %v584_v59 = vpop.f32.mrb[15].mxu1 }
 0x10a   :  { %v672_v60 = vmax.f32 %v454_v50, 0.0  ;;  %v704_v61 = vmax.f32 %v582_v51, 0.0  ;;  %v457_v62 = vadd.f32 %v1192_v34, %v456_v58  ;;  %v585_v63 = vadd.f32 %v1192_v34, %v584_v59 }
 0x10b   :  { %738 = vst [vmem:[%s1453_s3 + $0x70] sm:$0xff] %v674_v54  ;;  %770 = vst [vmem:[%s1453_s3 + $0x170] sm:$0xff] %v706_v55  ;;  %v675_v0 = vmax.f32 %v465_v56, 0.0  ;;  %v707_v1 = vmax.f32 %v593_v57, 0.0 }
 0x10c   :  { %736 = vst [vmem:[%s1453_s3 + $0x60] sm:$0xff] %v672_v60  ;;  %768 = vst [vmem:[%s1453_s3 + $0x160] sm:$0xff] %v704_v61  ;;  %v673_v2 = vmax.f32 %v457_v62, 0.0  ;;  %v705_v3 = vmax.f32 %v585_v63, 0.0 }
 0x10d   :  { %739 = vst [vmem:[%s1453_s3 + $0x78] sm:$0xff] %v675_v0  ;;  %771 = vst [vmem:[%s1453_s3 + $0x178] sm:$0xff] %v707_v1 }
 0x10e   :  { %737 = vst [vmem:[%s1453_s3 + $0x68] sm:$0xff] %v673_v2  ;;  %769 = vst [vmem:[%s1453_s3 + $0x168] sm:$0xff] %v705_v3  ;;  %v916_v4 = vpop.f32.mrb[16].mxu0  ;;  %v948_v5 = vpop.f32.mrb[16].mxu1 }
 0x10f   :  { %v478_v6 = vadd.f32 %v916_v4, %v1192_v34  ;;  %v606_v7 = vadd.f32 %v948_v5, %v1192_v34  ;;  %v469_v8 = vpop.f32.mrb[17].mxu0  ;;  %v597_v9 = vpop.f32.mrb[17].mxu1 }
 0x110   :  { %v470_v10 = vadd.f32 %v1192_v34, %v469_v8  ;;  %v598_v11 = vadd.f32 %v1192_v34, %v597_v9  ;;  %v917_v12 = vpop.f32.mrb[18].mxu0  ;;  %v949_v13 = vpop.f32.mrb[18].mxu1 }
 0x111   :  { %v678_v14 = vmax.f32 %v478_v6, 0.0  ;;  %v710_v15 = vmax.f32 %v606_v7, 0.0  ;;  %v481_v16 = vadd.f32 %v917_v12, %v1192_v34  ;;  %v609_v17 = vadd.f32 %v949_v13, %v1192_v34  ;;  %v472_v18 = vpop.f32.mrb[19].mxu0  ;;  %v600_v19 = vpop.f32.mrb[19].mxu1 }
 0x112   :  { %v676_v20 = vmax.f32 %v470_v10, 0.0  ;;  %v708_v21 = vmax.f32 %v598_v11, 0.0  ;;  %v473_v22 = vadd.f32 %v1192_v34, %v472_v18  ;;  %v601_v23 = vadd.f32 %v1192_v34, %v600_v19 }
 0x113   :  { %742 = vst [vmem:[%s1453_s3 + $0x90] sm:$0xff] %v678_v14  ;;  %774 = vst [vmem:[%s1453_s3 + $0x190] sm:$0xff] %v710_v15  ;;  %v679_v24 = vmax.f32 %v481_v16, 0.0  ;;  %v711_v25 = vmax.f32 %v609_v17, 0.0 }
 0x114   :  { %740 = vst [vmem:[%s1453_s3 + $0x80] sm:$0xff] %v676_v20  ;;  %772 = vst [vmem:[%s1453_s3 + $0x180] sm:$0xff] %v708_v21  ;;  %v677_v26 = vmax.f32 %v473_v22, 0.0  ;;  %v709_v27 = vmax.f32 %v601_v23, 0.0 }
 0x115   :  { %743 = vst [vmem:[%s1453_s3 + $0x98] sm:$0xff] %v679_v24  ;;  %775 = vst [vmem:[%s1453_s3 + $0x198] sm:$0xff] %v711_v25 }
 0x116   :  { %741 = vst [vmem:[%s1453_s3 + $0x88] sm:$0xff] %v677_v26  ;;  %773 = vst [vmem:[%s1453_s3 + $0x188] sm:$0xff] %v709_v27  ;;  %v920_v28 = vpop.f32.mrb[20].mxu0  ;;  %v952_v29 = vpop.f32.mrb[20].mxu1 }
 0x117   :  { %v494_v30 = vadd.f32 %v920_v28, %v1192_v34  ;;  %v622_v31 = vadd.f32 %v952_v29, %v1192_v34  ;;  %v485_v32 = vpop.f32.mrb[21].mxu0  ;;  %v613_v33 = vpop.f32.mrb[21].mxu1 }
 0x118   :  { %v486_v35 = vadd.f32 %v1192_v34, %v485_v32  ;;  %v614_v36 = vadd.f32 %v1192_v34, %v613_v33  ;;  %v921_v37 = vpop.f32.mrb[22].mxu0  ;;  %v953_v38 = vpop.f32.mrb[22].mxu1 }
 0x119   :  { %v682_v39 = vmax.f32 %v494_v30, 0.0  ;;  %v714_v40 = vmax.f32 %v622_v31, 0.0  ;;  %v497_v41 = vadd.f32 %v921_v37, %v1192_v34  ;;  %v625_v42 = vadd.f32 %v953_v38, %v1192_v34  ;;  %v488_v43 = vpop.f32.mrb[23].mxu0  ;;  %v616_v44 = vpop.f32.mrb[23].mxu1 }
 0x11a   :  { %v680_v45 = vmax.f32 %v486_v35, 0.0  ;;  %v712_v46 = vmax.f32 %v614_v36, 0.0  ;;  %v489_v47 = vadd.f32 %v1192_v34, %v488_v43  ;;  %v617_v48 = vadd.f32 %v1192_v34, %v616_v44 }
 0x11b   :  { %746 = vst [vmem:[%s1453_s3 + $0xb0] sm:$0xff] %v682_v39  ;;  %778 = vst [vmem:[%s1453_s3 + $0x1b0] sm:$0xff] %v714_v40  ;;  %v683_v49 = vmax.f32 %v497_v41, 0.0  ;;  %v715_v50 = vmax.f32 %v625_v42, 0.0 }
 0x11c   :  { %744 = vst [vmem:[%s1453_s3 + $0xa0] sm:$0xff] %v680_v45  ;;  %776 = vst [vmem:[%s1453_s3 + $0x1a0] sm:$0xff] %v712_v46  ;;  %v681_v51 = vmax.f32 %v489_v47, 0.0  ;;  %v713_v52 = vmax.f32 %v617_v48, 0.0 }
 0x11d   :  { %747 = vst [vmem:[%s1453_s3 + $0xb8] sm:$0xff] %v683_v49  ;;  %779 = vst [vmem:[%s1453_s3 + $0x1b8] sm:$0xff] %v715_v50 }
 0x11e   :  { %745 = vst [vmem:[%s1453_s3 + $0xa8] sm:$0xff] %v681_v51  ;;  %777 = vst [vmem:[%s1453_s3 + $0x1a8] sm:$0xff] %v713_v52  ;;  %v924_v53 = vpop.f32.mrb[24].mxu0  ;;  %v956_v54 = vpop.f32.mrb[24].mxu1 }
 0x11f   :  { %v510_v55 = vadd.f32 %v924_v53, %v1192_v34  ;;  %v638_v56 = vadd.f32 %v956_v54, %v1192_v34  ;;  %v501_v57 = vpop.f32.mrb[25].mxu0  ;;  %v629_v58 = vpop.f32.mrb[25].mxu1 }
 0x120   :  { %v502_v59 = vadd.f32 %v1192_v34, %v501_v57  ;;  %v630_v60 = vadd.f32 %v1192_v34, %v629_v58  ;;  %v925_v61 = vpop.f32.mrb[26].mxu0  ;;  %v957_v62 = vpop.f32.mrb[26].mxu1 }
 0x121   :  { %v686_v63 = vmax.f32 %v510_v55, 0.0  ;;  %v718_v0 = vmax.f32 %v638_v56, 0.0  ;;  %v513_v1 = vadd.f32 %v925_v61, %v1192_v34  ;;  %v641_v2 = vadd.f32 %v957_v62, %v1192_v34  ;;  %v504_v3 = vpop.f32.mrb[27].mxu0  ;;  %v632_v4 = vpop.f32.mrb[27].mxu1 }
 0x122   :  { %v684_v5 = vmax.f32 %v502_v59, 0.0  ;;  %v716_v6 = vmax.f32 %v630_v60, 0.0  ;;  %v505_v7 = vadd.f32 %v1192_v34, %v504_v3  ;;  %v633_v8 = vadd.f32 %v1192_v34, %v632_v4 }
 0x123   :  { %750 = vst [vmem:[%s1453_s3 + $0xd0] sm:$0xff] %v686_v63  ;;  %782 = vst [vmem:[%s1453_s3 + $0x1d0] sm:$0xff] %v718_v0  ;;  %v687_v9 = vmax.f32 %v513_v1, 0.0  ;;  %v719_v10 = vmax.f32 %v641_v2, 0.0 }
 0x124   :  { %748 = vst [vmem:[%s1453_s3 + $0xc0] sm:$0xff] %v684_v5  ;;  %780 = vst [vmem:[%s1453_s3 + $0x1c0] sm:$0xff] %v716_v6  ;;  %v685_v11 = vmax.f32 %v505_v7, 0.0  ;;  %v717_v12 = vmax.f32 %v633_v8, 0.0 }
 0x125   :  { %751 = vst [vmem:[%s1453_s3 + $0xd8] sm:$0xff] %v687_v9  ;;  %783 = vst [vmem:[%s1453_s3 + $0x1d8] sm:$0xff] %v719_v10 }
 0x126   :  { %749 = vst [vmem:[%s1453_s3 + $0xc8] sm:$0xff] %v685_v11  ;;  %781 = vst [vmem:[%s1453_s3 + $0x1c8] sm:$0xff] %v717_v12  ;;  %v928_v13 = vpop.f32.mrb[28].mxu0  ;;  %v960_v14 = vpop.f32.mrb[28].mxu1 }
 0x127   :  { %v526_v15 = vadd.f32 %v928_v13, %v1192_v34  ;;  %v654_v16 = vadd.f32 %v960_v14, %v1192_v34  ;;  %v517_v17 = vpop.f32.mrb[29].mxu0  ;;  %v645_v18 = vpop.f32.mrb[29].mxu1 }
 0x128   :  { %v518_v19 = vadd.f32 %v1192_v34, %v517_v17  ;;  %v646_v20 = vadd.f32 %v1192_v34, %v645_v18  ;;  %v929_v21 = vpop.f32.mrb[30].mxu0  ;;  %v961_v22 = vpop.f32.mrb[30].mxu1 }
 0x129   :  { %v690_v23 = vmax.f32 %v526_v15, 0.0  ;;  %v722_v24 = vmax.f32 %v654_v16, 0.0  ;;  %v529_v25 = vadd.f32 %v929_v21, %v1192_v34  ;;  %v657_v26 = vadd.f32 %v961_v22, %v1192_v34  ;;  %v520_v27 = vpop.f32.mrb[31].mxu0  ;;  %v648_v28 = vpop.f32.mrb[31].mxu1 }
 0x12a   :  { %v688_v29 = vmax.f32 %v518_v19, 0.0  ;;  %v720_v30 = vmax.f32 %v646_v20, 0.0  ;;  %v521_v31 = vadd.f32 %v1192_v34, %v520_v27  ;;  %v649_v32 = vadd.f32 %v1192_v34, %v648_v28 }
 0x12b   :  { %754 = vst [vmem:[%s1453_s3 + $0xf0] sm:$0xff] %v690_v23  ;;  %786 = vst [vmem:[%s1453_s3 + $0x1f0] sm:$0xff] %v722_v24  ;;  %v691_v33 = vmax.f32 %v529_v25, 0.0  ;;  %v723_v35 = vmax.f32 %v657_v26, 0.0 }
 0x12c   :  { %752 = vst [vmem:[%s1453_s3 + $0xe0] sm:$0xff] %v688_v29  ;;  %784 = vst [vmem:[%s1453_s3 + $0x1e0] sm:$0xff] %v720_v30  ;;  %v689_v36 = vmax.f32 %v521_v31, 0.0  ;;  %v721_v34 = vmax.f32 %v649_v32, 0.0 }
 0x12d   :  { %755 = vst [vmem:[%s1453_s3 + $0xf8] sm:$0xff] %v691_v33  ;;  %787 = vst [vmem:[%s1453_s3 + $0x1f8] sm:$0xff] %v723_v35 }
 0x12e   :  { %753 = vst [vmem:[%s1453_s3 + $0xe8] sm:$0xff] %v689_v36  ;;  %785 = vst [vmem:[%s1453_s3 + $0x1e8] sm:$0xff] %v721_v34 }
 0x12f   :  { %792 = vsyncpa [#allocation3], 1 }

</bundles_post_ra>
